<compile_context>
chip_gen: v7x
topology: tpu7x:2x2x1
jax: 0.10.0
libtpu: 0.0.40
codegen_flags: <defaults>
</compile_context>

<pallas_src>
import functools

import jax
import jax.numpy as jnp
from jax.experimental import pallas as pl
from jax.experimental.pallas import tpu as pltpu

EMB = 128
HIDDEN = 4 * EMB

_INV_SQRT2 = 0.7071067811865476  # hoisted 1/sqrt(2)


def _round_up(n, m):
    return ((n + m - 1) // m) * m


def _ffn_kernel(x_ref, w1_ref, b1_ref, w2_ref, b2_ref, o_ref):
    # x_ref:  (tm, E) f32      w1_ref: (E, H) bf16    b1_ref: (1, H) f32
    # w2_ref: (H, E) bf16      b2_ref: (1, E) f32     o_ref:  (tm, E) f32
    x = x_ref[...].astype(w1_ref.dtype)  # bf16 MXU operand

    # --- l1: x @ W1^T + b1 -> (tm, H), f32 accumulate ---
    h = jnp.dot(x, w1_ref[...], preferred_element_type=jnp.float32)
    h = h + b1_ref[...]

    # --- exact GELU (erf), f32 on the VPU ---
    h = 0.5 * h * (1.0 + jax.lax.erf(h * _INV_SQRT2))

    # --- l2: gelu(h) @ W2^T + b2 -> (tm, E), f32 accumulate ---
    y = jnp.dot(h.astype(w2_ref.dtype), w2_ref[...],
                preferred_element_type=jnp.float32)
    y = y + b2_ref[...]

    # Dropout in eval mode == identity.
    o_ref[...] = y.astype(o_ref.dtype)


def prepare_params(w1, b1, w2, b2, matmul_dtype=jnp.bfloat16):
    """One-time prep: pre-transpose weights to (in, out), pre-cast to the MXU
    dtype, pre-reshape biases to (1, out).  Avoids per-call XLA transposes."""
    w1t = jnp.asarray(w1).T.astype(matmul_dtype)          # (E, H)
    w2t = jnp.asarray(w2).T.astype(matmul_dtype)          # (H, E)
    b1r = jnp.asarray(b1).reshape(1, -1).astype(jnp.float32)  # (1, H)
    b2r = jnp.asarray(b2).reshape(1, -1).astype(jnp.float32)  # (1, E)
    return w1t, b1r, w2t, b2r


@functools.partial(jax.jit, static_argnames=("tm", "m_pad"))
def _feedforward_impl(x, w1t, b1r, w2t, b2r, *, tm, m_pad):
    B, S, E = x.shape
    H = w1t.shape[1]
    M = B * S

    x2d = x.reshape(M, E)
    if m_pad != M:
        x2d = jnp.pad(x2d, ((0, m_pad - M), (0, 0)))

    out = pl.pallas_call(
        _ffn_kernel,
        out_shape=jax.ShapeDtypeStruct((m_pad, E), x.dtype),
        grid_spec=pl.GridSpec(
            grid=(m_pad // tm,),
            in_specs=[
                pl.BlockSpec((tm, E), lambda i: (i, 0)),   # x tile (streamed)
                pl.BlockSpec((E, H), lambda i: (0, 0)),    # W1^T (resident)
                pl.BlockSpec((1, H), lambda i: (0, 0)),    # b1   (resident)
                pl.BlockSpec((H, E), lambda i: (0, 0)),    # W2^T (resident)
                pl.BlockSpec((1, E), lambda i: (0, 0)),    # b2   (resident)
            ],
            out_specs=pl.BlockSpec((tm, E), lambda i: (i, 0)),
        ),
        compiler_params=pltpu.CompilerParams(
            dimension_semantics=("parallel",),
        ),
    )(x2d, w1t, b1r, w2t, b2r)

    if m_pad != M:
        out = out[:M]
    return out.reshape(B, S, E)


def feedforward(x, params, *, tm=None):
    """x: (B, S, E) float32.  params: output of prepare_params()."""
    B, S, E = x.shape
    M = B * S
    if tm is None:
        # Large row tile (amortizes grid overhead, fills MXU M dim) but capped
        # so (tm, H) f32 intermediate + double-buffered x/out tiles stay well
        # under the scoped-VMEM default on every chip (incl. v7x's 64 MiB).
        tm = min(512, _round_up(M, 8))
    m_pad = _round_up(M, tm)
    return _feedforward_impl(x, *params, tm=tm, m_pad=m_pad)


def _reference(x, w1, b1, w2, b2):
    h = jnp.einsum("bse,he->bsh", x, w1) + b1
    h = jax.nn.gelu(h, approximate=False)
    return jnp.einsum("bsh,eh->bse", h, w2) + b2


if __name__ == "__main__":
    key = jax.random.PRNGKey(0)
    k_x, k_w1, k_b1, k_w2, k_b2 = jax.random.split(key, 5)

    B, S = 2, 8  # small seq; emb fixed at 128 by the module

    x = jax.random.normal(k_x, (B, S, EMB), dtype=jnp.float32)

    # Deterministic param init (mimic nn.Linear's uniform(-1/sqrt(in), 1/sqrt(in)))
    bound1 = 1.0 / (EMB ** 0.5)
    w1 = jax.random.uniform(k_w1, (HIDDEN, EMB), jnp.float32, -bound1, bound1)
    b1 = jax.random.uniform(k_b1, (HIDDEN,), jnp.float32, -bound1, bound1)
    bound2 = 1.0 / (HIDDEN ** 0.5)
    w2 = jax.random.uniform(k_w2, (EMB, HIDDEN), jnp.float32, -bound2, bound2)
    b2 = jax.random.uniform(k_b2, (EMB,), jnp.float32, -bound2, bound2)

    params = prepare_params(w1, b1, w2, b2)       # bf16 MXU operands
    y = feedforward(x, params)
    y = jax.block_until_ready(y)

    y_ref = _reference(x, w1, b1, w2, b2)
    assert y.shape == (B, S, EMB)
    # bf16 matmul operands (f32 accumulation) -> relaxed tolerance vs f32 ref.
    assert jnp.allclose(y, y_ref, atol=2e-2, rtol=2e-2), "mismatch vs reference"

    print("KERNEL_OK")
</pallas_src>

<mosaic_0001>
module attributes {stable_mosaic.version = 11 : i64} {
  func.func @_ffn_kernel(%arg0: i32, %arg1: memref<16x128xf32, #tpu.memory_space<vmem>>, %arg2: memref<128x512xbf16, #tpu.memory_space<vmem>>, %arg3: memref<1x512xf32, #tpu.memory_space<vmem>>, %arg4: memref<512x128xbf16, #tpu.memory_space<vmem>>, %arg5: memref<1x128xf32, #tpu.memory_space<vmem>>, %arg6: memref<16x128xf32, #tpu.memory_space<vmem>>) attributes {dimension_semantics = [#tpu.dimension_semantics<parallel>], iteration_bounds = array<i64: 1>, scalar_prefetch = 0 : i64, scratch_operands = 0 : i64, tpu.core_type = #tpu.core_type<tc>, window_params = [{transform_indices = @transform_0, window_bounds = array<i64: 16, 128>}, {pipeline_mode = #tpu.pipeline_mode<synchronous>, transform_indices = @transform_1, window_bounds = array<i64: 128, 512>}, {pipeline_mode = #tpu.pipeline_mode<synchronous>, transform_indices = @transform_2, window_bounds = array<i64: 1, 512>}, {pipeline_mode = #tpu.pipeline_mode<synchronous>, transform_indices = @transform_3, window_bounds = array<i64: 512, 128>}, {pipeline_mode = #tpu.pipeline_mode<synchronous>, transform_indices = @transform_4, window_bounds = array<i64: 1, 128>}, {transform_indices = @transform_5, window_bounds = array<i64: 16, 128>}]} {
    %c0 = arith.constant 0 : index
    %c0_0 = arith.constant 0 : index
    %0 = vector.load %arg1[%c0, %c0_0] : memref<16x128xf32, #tpu.memory_space<vmem>>, vector<16x128xf32>
    %1 = arith.truncf %0 : vector<16x128xf32> to vector<16x128xbf16>
    %c0_1 = arith.constant 0 : index
    %c0_2 = arith.constant 0 : index
    %2 = vector.load %arg2[%c0_1, %c0_2] : memref<128x512xbf16, #tpu.memory_space<vmem>>, vector<128x512xbf16>
    %cst = arith.constant dense<0.000000e+00> : vector<16x512xf32>
    %3 = tpu.matmul %1, %2, %cst {dimension_numbers = #tpu.dot_dimension_numbers<[1], [0], [0], [1], [0, 0, 1, 1], [], []>} : vector<16x128xbf16>, vector<128x512xbf16>, vector<16x512xf32> -> vector<16x512xf32>
    %c0_3 = arith.constant 0 : index
    %c0_4 = arith.constant 0 : index
    %4 = vector.load %arg3[%c0_3, %c0_4] : memref<1x512xf32, #tpu.memory_space<vmem>>, vector<1x512xf32>
    %5 = vector.broadcast %4 : vector<1x512xf32> to vector<16x512xf32>
    %6 = arith.addf %3, %5 : vector<16x512xf32>
    %cst_5 = arith.constant 5.000000e-01 : f32
    %7 = vector.broadcast %cst_5 : f32 to vector<16x512xf32>
    %8 = arith.mulf %7, %6 : vector<16x512xf32>
    %cst_6 = arith.constant 0.707106769 : f32
    %9 = vector.broadcast %cst_6 : f32 to vector<16x512xf32>
    %10 = arith.mulf %6, %9 : vector<16x512xf32>
    %11 = math.erf %10 : vector<16x512xf32>
    %cst_7 = arith.constant 1.000000e+00 : f32
    %12 = vector.broadcast %cst_7 : f32 to vector<16x512xf32>
    %13 = arith.addf %12, %11 : vector<16x512xf32>
    %14 = arith.mulf %8, %13 : vector<16x512xf32>
    %15 = arith.truncf %14 : vector<16x512xf32> to vector<16x512xbf16>
    %c0_8 = arith.constant 0 : index
    %c0_9 = arith.constant 0 : index
    %16 = vector.load %arg4[%c0_8, %c0_9] : memref<512x128xbf16, #tpu.memory_space<vmem>>, vector<512x128xbf16>
    %cst_10 = arith.constant dense<0.000000e+00> : vector<16x128xf32>
    %17 = tpu.matmul %15, %16, %cst_10 {dimension_numbers = #tpu.dot_dimension_numbers<[1], [0], [0], [1], [0, 0, 1, 1], [], []>} : vector<16x512xbf16>, vector<512x128xbf16>, vector<16x128xf32> -> vector<16x128xf32>
    %c0_11 = arith.constant 0 : index
    %c0_12 = arith.constant 0 : index
    %18 = vector.load %arg5[%c0_11, %c0_12] : memref<1x128xf32, #tpu.memory_space<vmem>>, vector<1x128xf32>
    %19 = vector.broadcast %18 : vector<1x128xf32> to vector<16x128xf32>
    %20 = arith.addf %17, %19 : vector<16x128xf32>
    %c0_13 = arith.constant 0 : index
    %c0_14 = arith.constant 0 : index
    %21 = vector.load %arg6[%c0_13, %c0_14] : memref<16x128xf32, #tpu.memory_space<vmem>>, vector<16x128xf32>
    tpu.vector_store %arg6[%c0_13, %c0_14], %20 {strides = array<i32>} : memref<16x128xf32, #tpu.memory_space<vmem>>, vector<16x128xf32>,
    return
  }
  func.func @transform_0(%arg0: i32) -> (i32, i32) {
    %c0_i32 = arith.constant 0 : i32
    %c0_i32_0 = arith.constant 0 : i32
    return %arg0, %c0_i32 : i32, i32
  }
  func.func @transform_1(%arg0: i32) -> (i32, i32) {
    %c0_i32 = arith.constant 0 : i32
    %c0_i32_0 = arith.constant 0 : i32
    %c0_i32_1 = arith.constant 0 : i32
    return %c0_i32, %c0_i32_0 : i32, i32
  }
  func.func @transform_2(%arg0: i32) -> (i32, i32) {
    %c0_i32 = arith.constant 0 : i32
    %c0_i32_0 = arith.constant 0 : i32
    %c0_i32_1 = arith.constant 0 : i32
    return %c0_i32, %c0_i32_0 : i32, i32
  }
  func.func @transform_3(%arg0: i32) -> (i32, i32) {
    %c0_i32 = arith.constant 0 : i32
    %c0_i32_0 = arith.constant 0 : i32
    %c0_i32_1 = arith.constant 0 : i32
    return %c0_i32, %c0_i32_0 : i32, i32
  }
  func.func @transform_4(%arg0: i32) -> (i32, i32) {
    %c0_i32 = arith.constant 0 : i32
    %c0_i32_0 = arith.constant 0 : i32
    %c0_i32_1 = arith.constant 0 : i32
    return %c0_i32, %c0_i32_0 : i32, i32
  }
  func.func @transform_5(%arg0: i32) -> (i32, i32) {
    %c0_i32 = arith.constant 0 : i32
    %c0_i32_0 = arith.constant 0 : i32
    return %arg0, %c0_i32 : i32, i32
  }
}

</mosaic_0001>

<bundles_post_ra>
// kernel: _feedforward_impl.1
= control target key start
LH: loop header
LB: loop body
LE: loop exit
PB: predicated region body
PF: predicated region fallthrough
CT: control target
= control target key end

     0   :  { %10 = vsyncpa [#allocation3], 0  ;;  %s1186_s0 = inlined_call_operand.hbm [shape: f32[16,128], index: 0, kind: input, shape index: {}]   ;;  %s1187_s1 = inlined_call_operand.hbm [shape: bf16[128,512], index: 1, kind: input, shape index: {}]   ;;  %s1188_s2 = inlined_call_operand.vmem [shape: f32[1,512], index: 2, kind: input, shape index: {}]   ;;  %s1189_s3 = inlined_call_operand.hbm [shape: bf16[512,128], index: 3, kind: input, shape index: {}]   ;;  %s1190_s4 = inlined_call_operand.vmem [shape: f32[1,128], index: 4, kind: input, shape index: {}]   ;;  %s1191_s5 = inlined_call_operand.hbm [shape: f32[16,128], index: 5, kind: output, shape index: {}]  }
   0x1   :  { %11 = vsyncpa [#allocation6], 0 }
   0x2   :  { %12 = vsyncpa [#allocation4], 0  ;;  %s1085_s18 = smov [#allocation5]   ;;  %s991_s22 = scalar_lea.hbm %s1187_s1, 4096 }
   0x3   :  { %s30_s19 = sshll.u32 %s1085_s18, 4  ;;  %p992_p0 = scmp.ne.s32.totalorder %s1187_s1, %s991_s22  ;;  %s31_s19 = int_to_ptr.vmem [resolvable:$true] %s30_s19 }
   0x4   :  { %p995_p1 = scmp.lt.u32.totalorder %s991_s22, %s1187_s1 }
   0x6   :  { %p997_p2 = pnand %p995_p1, %p992_p0 }
   0x8   :  { %1000 = shalt.err (!%p997_p2)
}
   0x9   :  { %s1001_s27 = scalar_lea.vmem %s31_s19, 4096  ;;  %p1006_p4 = scmp.lt.s32.totalorder %s31_s19, %s31_s19 }
   0xa   :  { %p1002_p3 = scmp.ne.s32.totalorder %s31_s19, %s1001_s27  ;;  %p1007_p5 = scmp.lt.s32.totalorder %s1001_s27, %s1001_s27 }
   0xc   :  { %p1008_p6 = por %p1007_p5, %p1006_p4 }
   0xe   :  { %p1009_p7 = pnand %p1008_p6, %p1002_p3 }
  0x10   :  { %1012 = shalt.err (!%p1009_p7)
}
  0x11   :  { %s1086_s28 = smov 256   ;;  %s1087_s29 = smov 16  }
  0x12   :  { %36 = dma.hbm_to_vmem [thread:$0]  %s1187_s1, 4096, %s31_s19, [#allocation6], %s1086_s28, %s1086_s28, %s1087_s29  }
  0x13   :  { %s1088_s7 = smov [#allocation2]   ;;  %s1013_s11 = scalar_lea.hbm %s1186_s0, 256 }
  0x14   :  { %s18_s8 = sshll.u32 %s1088_s7, 4  ;;  %p1014_p8 = scmp.ne.s32.totalorder %s1186_s0, %s1013_s11  ;;  %s19_s8 = int_to_ptr.vmem [resolvable:$true] %s18_s8 }
  0x15   :  { %p1017_p9 = scmp.lt.u32.totalorder %s1013_s11, %s1186_s0 }
  0x17   :  { %p1019_p10 = pnand %p1017_p9, %p1014_p8 }
  0x19   :  { %1022 = shalt.err (!%p1019_p10)
}
  0x1a   :  { %s1023_s16 = scalar_lea.vmem %s19_s8, 256  ;;  %p1028_p12 = scmp.lt.s32.totalorder %s19_s8, %s19_s8 }
  0x1b   :  { %p1024_p11 = scmp.ne.s32.totalorder %s19_s8, %s1023_s16  ;;  %p1029_p13 = scmp.lt.s32.totalorder %s1023_s16, %s1023_s16 }
  0x1d   :  { %p1030_p0 = por %p1029_p13, %p1028_p12 }
  0x1f   :  { %p1031_p1 = pnand %p1030_p0, %p1024_p11 }
  0x21   :  { %1034 = shalt.err (!%p1031_p1)
}
  0x22   :  { %s1089_s1 = smov 128   ;;  %s1090_s17 = smov 8  }
  0x23   :  { %24 = dma.hbm_to_vmem [thread:$0]  %s1186_s0, 256, %s19_s8, [#allocation3], %s1089_s1, %s1089_s1, %s1090_s17  }
  0x24   :  { %s1091_s20 = smov [#allocation7]   ;;  %s1035_s24 = scalar_lea.hbm %s1189_s3, 4096 }
  0x25   :  { %s44_s21 = sshll.u32 %s1091_s20, 4  ;;  %p1036_p2 = scmp.ne.s32.totalorder %s1189_s3, %s1035_s24  ;;  %s45_s21 = int_to_ptr.vmem [resolvable:$true] %s44_s21 }
  0x26   :  { %p1039_p3 = scmp.lt.u32.totalorder %s1035_s24, %s1189_s3 }
  0x28   :  { %p1041_p4 = pnand %p1039_p3, %p1036_p2 }
  0x2a   :  { %1044 = shalt.err (!%p1041_p4)
}
  0x2b   :  { %s1045_s29 = scalar_lea.vmem %s45_s21, 4096  ;;  %p1050_p6 = scmp.lt.s32.totalorder %s45_s21, %s45_s21 }
  0x2c   :  { %p1046_p5 = scmp.ne.s32.totalorder %s45_s21, %s1045_s29  ;;  %p1051_p7 = scmp.lt.s32.totalorder %s1045_s29, %s1045_s29 }
  0x2e   :  { %p1052_p8 = por %p1051_p7, %p1050_p6 }
  0x30   :  { %p1053_p9 = pnand %p1052_p8, %p1046_p5 }
  0x32   :  { %1056 = shalt.err (!%p1053_p9)
}
  0x33   :  { %s1092_s0 = smov 64   ;;  %s1093_s30 = smov 4  }
  0x34   :  { %50 = dma.hbm_to_vmem [thread:$0]  %s1189_s3, 4096, %s45_s21, [#allocation6], %s1092_s0, %s1092_s0, %s1093_s30  }
  0x35   :  { %1079 = dma.done.wait [#allocation3], 256  }
  0x36   :  { %1080 = vsyncadd [#allocation3], 4294967040 }
  0x37   :  { %1081 = dma.done.wait [#allocation6], 8192  }
  0x38   :  { %1082 = vsyncadd [#allocation6], 4294959104  ;;  %v1094_v0 = vmov 0   ;;  %v895_v1 = vld [vmem:[#allocation5 + $0x4] ss:$16 sps:$4 sm:$0xff]   ;;  %v64_v34 = vld [vmem:[#allocation2 + $0x8] sm:$0xff] }
  0x39   :  { %312 = vmatprep.mubr.bf16.mxu0 %v1094_v0  ;;  %355 = vmatprep.mubr.bf16.mxu1 %v1094_v0  ;;  %v897_v2 = vld [vmem:[#allocation5 + $0xc] ss:$16 sps:$4 sm:$0xff]   ;;  %v899_v3 = vld [vmem:[#allocation5] ss:$16 sps:$4 sm:$0xff]   ;;  %v900_v4 = vld [vmem:[#allocation5 + $0x8] ss:$16 sps:$4 sm:$0xff]  }
  0x3a   :  { %280 = vmatprep.subr.bf16.mxu0 %v895_v1  ;;  %323 = vmatprep.subr.bf16.mxu1 %v897_v2  ;;  %v901_v5 = vld [vmem:[#allocation5 + $0x24] ss:$16 sps:$4 sm:$0xff]   ;;  %v903_v6 = vld [vmem:[#allocation5 + $0x2c] ss:$16 sps:$4 sm:$0xff]   ;;  %v905_v7 = vld [vmem:[#allocation5 + $0x20] ss:$16 sps:$4 sm:$0xff]  }
  0x3b   :  { %281 = vmatpush1.bf16.msra.mxu0 %v899_v3  ;;  %324 = vmatpush1.bf16.msra.mxu1 %v900_v4  ;;  %v906_v8 = vld [vmem:[#allocation5 + $0x28] ss:$16 sps:$4 sm:$0xff]   ;;  %v907_v9 = vld [vmem:[#allocation5 + $0x44] ss:$16 sps:$4 sm:$0xff]   ;;  %v909_v10 = vld [vmem:[#allocation5 + $0x4c] ss:$16 sps:$4 sm:$0xff]   ;;  %v100_v4 = vlaneseq }
  0x3c   :  { %282 = vmatprep.subr.bf16.mxu0 %v901_v5  ;;  %325 = vmatprep.subr.bf16.mxu1 %v903_v6  ;;  %v911_v11 = vld [vmem:[#allocation5 + $0x40] ss:$16 sps:$4 sm:$0xff]   ;;  %v912_v12 = vld [vmem:[#allocation5 + $0x48] ss:$16 sps:$4 sm:$0xff]   ;;  %v913_v13 = vld [vmem:[#allocation5 + $0x64] ss:$16 sps:$4 sm:$0xff]  }
  0x3d   :  { %v915_v14 = vld [vmem:[#allocation5 + $0x6c] ss:$16 sps:$4 sm:$0xff]   ;;  %v917_v15 = vld [vmem:[#allocation5 + $0x60] ss:$16 sps:$4 sm:$0xff]   ;;  %v918_v16 = vld [vmem:[#allocation5 + $0x68] ss:$16 sps:$4 sm:$0xff]  }
  0x3e   :  { %v919_v17 = vld [vmem:[#allocation5 + $0x84] ss:$16 sps:$4 sm:$0xff]   ;;  %v921_v18 = vld [vmem:[#allocation5 + $0x8c] ss:$16 sps:$4 sm:$0xff]   ;;  %v923_v19 = vld [vmem:[#allocation5 + $0x80] ss:$16 sps:$4 sm:$0xff]  }
  0x3f   :  { %283 = vmatpush1.bf16.msra.mxu0 %v905_v7  ;;  %326 = vmatpush1.bf16.msra.mxu1 %v906_v8  ;;  %v924_v20 = vld [vmem:[#allocation5 + $0x88] ss:$16 sps:$4 sm:$0xff]   ;;  %v925_v21 = vld [vmem:[#allocation5 + $0xa4] ss:$16 sps:$4 sm:$0xff]   ;;  %v927_v22 = vld [vmem:[#allocation5 + $0xac] ss:$16 sps:$4 sm:$0xff]  }
  0x40   :  { %284 = vmatprep.subr.bf16.mxu0 %v907_v9  ;;  %327 = vmatprep.subr.bf16.mxu1 %v909_v10  ;;  %v929_v23 = vld [vmem:[#allocation5 + $0xa0] ss:$16 sps:$4 sm:$0xff]   ;;  %v930_v24 = vld [vmem:[#allocation5 + $0xa8] ss:$16 sps:$4 sm:$0xff]   ;;  %v931_v25 = vld [vmem:[#allocation5 + $0xc4] ss:$16 sps:$4 sm:$0xff]  }
  0x41   :  { %v933_v26 = vld [vmem:[#allocation5 + $0xcc] ss:$16 sps:$4 sm:$0xff]   ;;  %v935_v27 = vld [vmem:[#allocation5 + $0xc0] ss:$16 sps:$4 sm:$0xff]   ;;  %v936_v28 = vld [vmem:[#allocation5 + $0xc8] ss:$16 sps:$4 sm:$0xff]  }
  0x42   :  { %v937_v29 = vld [vmem:[#allocation5 + $0xe4] ss:$16 sps:$4 sm:$0xff]   ;;  %v939_v30 = vld [vmem:[#allocation5 + $0xec] ss:$16 sps:$4 sm:$0xff]   ;;  %v941_v31 = vld [vmem:[#allocation5 + $0xe0] ss:$16 sps:$4 sm:$0xff]  }
  0x43   :  { %285 = vmatpush1.bf16.msra.mxu0 %v911_v11  ;;  %328 = vmatpush1.bf16.msra.mxu1 %v912_v12  ;;  %v942_v32 = vld [vmem:[#allocation5 + $0xe8] ss:$16 sps:$4 sm:$0xff]   ;;  %v63_v33 = vld [vmem:[#allocation2] sm:$0xff]  ;;  %v943_v35 = vld [vmem:[#allocation7 + $0x40] sm:$0xff]   ;;  %v101_v5 = vshrl.u32 %v100_v4, 7  ;;  %s1095_s10 = smov [#allocation8]  }
  0x44   :  { %286 = vmatprep.subr.bf16.mxu0 %v913_v13  ;;  %329 = vmatprep.subr.bf16.mxu1 %v915_v14  ;;  %v944_v36 = vld [vmem:[#allocation7 + $0xc0] sm:$0xff]   ;;  %v65_v39 = vpack.c.bf16 %v64_v34, %v63_v33  ;;  %v947_v40 = vld [vmem:[#allocation7 + $0x48] sm:$0xff]   ;;  %v951_v44 = vld [vmem:[#allocation7 + $0x50] sm:$0xff]   ;;  %s762_s11 = sshll.u32 %s1095_s10, 4  ;;  %s763_s11 = int_to_ptr.vmem [resolvable:$true] %s762_s11 }
  0x45   :  { %v945_v37 = vld [vmem:[#allocation7] sm:$0xff]   ;;  %v948_v41 = vld [vmem:[#allocation7 + $0xc8] sm:$0xff]   ;;  %v952_v45 = vld [vmem:[#allocation7 + $0xd0] sm:$0xff]   ;;  %v102_v6 = vsub.s32 0, %v101_v5  ;;  %v110_v7 = vsub.s32 2, %v101_v5  ;;  %v106_v9 = vsub.s32 1, %v101_v5  ;;  %p1062_p11 = scmp.lt.s32.totalorder %s763_s11, %s763_s11 }
  0x46   :  { %v946_v38 = vld [vmem:[#allocation7 + $0x80] sm:$0xff]   ;;  %v949_v42 = vld [vmem:[#allocation7 + $0x8] sm:$0xff]   ;;  %v953_v46 = vld [vmem:[#allocation7 + $0x10] sm:$0xff]   ;;  %v114_v10 = vsub.s32 3, %v101_v5 }
  0x47   :  { %287 = vmatpush1.bf16.msra.mxu0 %v917_v15  ;;  %330 = vmatpush1.bf16.msra.mxu1 %v918_v16  ;;  %v950_v43 = vld [vmem:[#allocation7 + $0x88] sm:$0xff]   ;;  %v954_v47 = vld [vmem:[#allocation7 + $0x90] sm:$0xff]   ;;  %v955_v48 = vld [vmem:[#allocation7 + $0x58] sm:$0xff]  }
  0x48   :  { %288 = vmatprep.subr.bf16.mxu0 %v919_v17  ;;  %331 = vmatprep.subr.bf16.mxu1 %v921_v18  ;;  %v956_v49 = vld [vmem:[#allocation7 + $0xd8] sm:$0xff]   ;;  %v959_v52 = vld [vmem:[#allocation7 + $0x60] sm:$0xff]   ;;  %v963_v56 = vld [vmem:[#allocation7 + $0x68] sm:$0xff]  }
  0x49   :  { %v957_v50 = vld [vmem:[#allocation7 + $0x18] sm:$0xff]   ;;  %v960_v53 = vld [vmem:[#allocation7 + $0xe0] sm:$0xff]   ;;  %v964_v57 = vld [vmem:[#allocation7 + $0xe8] sm:$0xff]  }
  0x4a   :  { %v958_v51 = vld [vmem:[#allocation7 + $0x98] sm:$0xff]   ;;  %v961_v54 = vld [vmem:[#allocation7 + $0x20] sm:$0xff]   ;;  %v965_v58 = vld [vmem:[#allocation7 + $0x28] sm:$0xff]  }
  0x4b   :  { %289 = vmatpush1.bf16.msra.mxu0 %v923_v19  ;;  %332 = vmatpush1.bf16.msra.mxu1 %v924_v20  ;;  %v962_v55 = vld [vmem:[#allocation7 + $0xa0] sm:$0xff]   ;;  %v966_v59 = vld [vmem:[#allocation7 + $0xa8] sm:$0xff]   ;;  %v967_v60 = vld [vmem:[#allocation7 + $0x70] sm:$0xff]  }
  0x4c   :  { %290 = vmatprep.subr.bf16.mxu0 %v925_v21  ;;  %333 = vmatprep.subr.bf16.mxu1 %v927_v22  ;;  %v968_v61 = vld [vmem:[#allocation7 + $0xf0] sm:$0xff]   ;;  %v971_v0 = vld [vmem:[#allocation7 + $0x78] sm:$0xff]  }
  0x4d   :  { %v969_v62 = vld [vmem:[#allocation7 + $0x30] sm:$0xff]   ;;  %v972_v1 = vld [vmem:[#allocation7 + $0xf8] sm:$0xff]  }
  0x4e   :  { %v970_v63 = vld [vmem:[#allocation7 + $0xb0] sm:$0xff]   ;;  %v973_v2 = vld [vmem:[#allocation7 + $0x38] sm:$0xff]  }
  0x4f   :  { %291 = vmatpush1.bf16.msra.mxu0 %v929_v23  ;;  %334 = vmatpush1.bf16.msra.mxu1 %v930_v24  ;;  %v974_v3 = vld [vmem:[#allocation7 + $0xb8] sm:$0xff]   ;;  %v98_v8 = vld [vmem:[%s1188_s2] sm:$0xf] }
  0x50   :  { %292 = vmatprep.subr.bf16.mxu0 %v931_v25  ;;  %335 = vmatprep.subr.bf16.mxu1 %v933_v26  ;;  %v103_v11 = vrot.slane %v98_v8, %v102_v6  ;;  %v111_v12 = vrot.slane %v98_v8, %v110_v7  ;;  %v107_v13 = vrot.slane %v98_v8, %v106_v9 }
  0x51   :  { %v115_v14 = vrot.slane %v98_v8, %v114_v10 }
  0x53   :  { %293 = vmatpush1.bf16.msra.mxu0 %v935_v27  ;;  %336 = vmatpush1.bf16.msra.mxu1 %v936_v28 }
  0x54   :  { %294 = vmatprep.subr.bf16.mxu0 %v937_v29  ;;  %337 = vmatprep.subr.bf16.mxu1 %v939_v30 }
  0x57   :  { %295 = vmatpush1.bf16.msra.mxu0 %v941_v31  ;;  %338 = vmatpush1.bf16.msra.mxu1 %v942_v32 }
  0x58   :  { %840 = vmatprep.subr.bf16.mxu0 %v943_v35  ;;  %862 = vmatprep.subr.bf16.mxu1 %v944_v36 }
  0x5a   :  { %313 = vmatmul.mubr.bf16.vlgmr.msra.gmra.mrb[0].mxu0 %v65_v39  ;;  %356 = vmatmul.mubr.bf16.vlgmr.msra.gmra.mrb[0].mxu1 %v65_v39 }
  0x5b   :  { %841 = vmatpush3.bf16.msra.mxu0 %v945_v37  ;;  %863 = vmatpush3.bf16.msra.mxu1 %v946_v38 }
  0x5c   :  { %842 = vmatprep.subr.bf16.mxu0 %v947_v40  ;;  %864 = vmatprep.subr.bf16.mxu1 %v948_v41 }
  0x5f   :  { %843 = vmatpush3.bf16.msra.mxu0 %v949_v42  ;;  %865 = vmatpush3.bf16.msra.mxu1 %v950_v43 }
  0x60   :  { %844 = vmatprep.subr.bf16.mxu0 %v951_v44  ;;  %866 = vmatprep.subr.bf16.mxu1 %v952_v45 }
  0x63   :  { %845 = vmatpush3.bf16.msra.mxu0 %v953_v46  ;;  %867 = vmatpush3.bf16.msra.mxu1 %v954_v47 }
  0x64   :  { %846 = vmatprep.subr.bf16.mxu0 %v955_v48  ;;  %868 = vmatprep.subr.bf16.mxu1 %v956_v49 }
  0x67   :  { %847 = vmatpush3.bf16.msra.mxu0 %v957_v50  ;;  %869 = vmatpush3.bf16.msra.mxu1 %v958_v51 }
  0x68   :  { %848 = vmatprep.subr.bf16.mxu0 %v959_v52  ;;  %870 = vmatprep.subr.bf16.mxu1 %v960_v53 }
  0x6b   :  { %849 = vmatpush3.bf16.msra.mxu0 %v961_v54  ;;  %871 = vmatpush3.bf16.msra.mxu1 %v962_v55 }
  0x6c   :  { %850 = vmatprep.subr.bf16.mxu0 %v963_v56  ;;  %872 = vmatprep.subr.bf16.mxu1 %v964_v57 }
  0x6f   :  { %851 = vmatpush3.bf16.msra.mxu0 %v965_v58  ;;  %873 = vmatpush3.bf16.msra.mxu1 %v966_v59 }
  0x70   :  { %852 = vmatprep.subr.bf16.mxu0 %v967_v60  ;;  %874 = vmatprep.subr.bf16.mxu1 %v968_v61 }
  0x73   :  { %853 = vmatpush3.bf16.msra.mxu0 %v969_v62  ;;  %875 = vmatpush3.bf16.msra.mxu1 %v970_v63 }
  0x74   :  { %854 = vmatprep.subr.bf16.mxu0 %v971_v0  ;;  %876 = vmatprep.subr.bf16.mxu1 %v972_v1 }
  0x77   :  { %855 = vmatpush3.bf16.msra.mxu0 %v973_v2  ;;  %877 = vmatpush3.bf16.msra.mxu1 %v974_v3 }
 0x12d   :  { %v314_v15 = vpop.f32.mrb[0].mxu0  ;;  %v357_v16 = vpop.f32.mrb[0].mxu1 }
 0x12e   :  { %v315_v17 = vadd.f32 %v314_v15, %v103_v11  ;;  %v358_v18 = vadd.f32 %v357_v16, %v111_v12  ;;  %v316_v19 = vpop.f32.mrb[1].mxu0  ;;  %v359_v20 = vpop.f32.mrb[1].mxu1 }
 0x12f   :  { %v317_v21 = vadd.f32 %v316_v19, %v107_v13  ;;  %v360_v22 = vadd.f32 %v359_v20, %v115_v14  ;;  %v318_v23 = vpop.f32.mrb[2].mxu0  ;;  %v361_v24 = vpop.f32.mrb[2].mxu1 }
 0x130   :  { %v374_v25 = vmul.f32 0.70710677, %v315_v17  ;;  %v376_v26 = vmul.f32 0.70710677, %v358_v18  ;;  %v319_v29 = vadd.f32 %v318_v23, %v103_v11  ;;  %v362_v30 = vadd.f32 %v361_v24, %v111_v12  ;;  %v320_v31 = vpop.f32.mrb[3].mxu0  ;;  %v363_v32 = vpop.f32.mrb[3].mxu1 }
 0x131   :  { %v375_v27 = vmul.f32 0.70710677, %v317_v21  ;;  %v377_v28 = vmul.f32 0.70710677, %v360_v22  ;;  %v321_v33 = vadd.f32 %v320_v31, %v107_v13  ;;  %v364_v34 = vadd.f32 %v363_v32, %v115_v14  ;;  %v807_v13 = vld [vmem:[%s1190_s4] ss:$0 sm:$0xff] }
 0x132   :  { %975 = verf.f32 %v374_v25  ;;  %v378_v35 = vmul.f32 0.70710677, %v319_v29  ;;  %v380_v36 = vmul.f32 0.70710677, %v362_v30  ;;  %v366_v45 = vmul.f32 0.5, %v315_v17  ;;  %s1057_s4 = scalar_lea.vmem %s763_s11, 256 }
 0x133   :  { %977 = verf.f32 %v376_v26  ;;  %v379_v37 = vmul.f32 0.70710677, %v321_v33  ;;  %v381_v38 = vmul.f32 0.70710677, %v364_v34  ;;  %v368_v46 = vmul.f32 0.5, %v358_v18  ;;  %p1058_p10 = scmp.ne.s32.totalorder %s763_s11, %s1057_s4  ;;  %p1063_p12 = scmp.lt.s32.totalorder %s1057_s4, %s1057_s4 }
 0x134   :  { %979 = verf.f32 %v375_v27  ;;  %v367_v49 = vmul.f32 0.5, %v317_v21  ;;  %v370_v51 = vmul.f32 0.5, %v319_v29  ;;  %v369_v54 = vmul.f32 0.5, %v360_v22 }
 0x135   :  { %981 = verf.f32 %v377_v28  ;;  %v372_v56 = vmul.f32 0.5, %v362_v30  ;;  %v371_v61 = vmul.f32 0.5, %v321_v33  ;;  %v373_v1 = vmul.f32 0.5, %v364_v34  ;;  %p1064_p13 = por %p1063_p12, %p1062_p11 }
 0x136   :  { %983 = verf.f32 %v378_v35 }
 0x137   :  { %985 = verf.f32 %v380_v36  ;;  %p1065_p0 = pnand %p1064_p13, %p1058_p10 }
 0x138   :  { %987 = verf.f32 %v379_v37 }
 0x139   :  { %989 = verf.f32 %v381_v38 }
 0x13c   :  { %v976_v39 = vpop.eup %975 }
 0x13d   :  { %v978_v40 = vpop.eup %977  ;;  %v390_v43 = vadd.f32 1.0, %v976_v39 }
 0x13e   :  { %v980_v41 = vpop.eup %979  ;;  %v392_v47 = vadd.f32 1.0, %v978_v40 }
 0x13f   :  { %v982_v42 = vpop.eup %981  ;;  %v391_v50 = vadd.f32 1.0, %v980_v41  ;;  %v398_v59 = vmul.f32 %v390_v43, %v366_v45 }
 0x140   :  { %v984_v44 = vpop.eup %983  ;;  %v393_v55 = vadd.f32 1.0, %v982_v42  ;;  %v400_v63 = vmul.f32 %v392_v47, %v368_v46 }
 0x141   :  { %v986_v48 = vpop.eup %985  ;;  %v394_v52 = vadd.f32 1.0, %v984_v44  ;;  %v399_v3 = vmul.f32 %v391_v50, %v367_v49 }
 0x142   :  { %v988_v53 = vpop.eup %987  ;;  %v396_v57 = vadd.f32 1.0, %v986_v48  ;;  %v401_v6 = vmul.f32 %v393_v55, %v369_v54 }
 0x143   :  { %v990_v58 = vpop.eup %989  ;;  %v402_v60 = vmul.f32 %v394_v52, %v370_v51  ;;  %v395_v62 = vadd.f32 1.0, %v988_v53 }
 0x144   :  { %v404_v0 = vmul.f32 %v396_v57, %v372_v56  ;;  %v397_v2 = vadd.f32 1.0, %v990_v58 }
 0x145   :  { %v406_v4 = vpack.c.bf16 %v402_v60, %v398_v59  ;;  %v403_v5 = vmul.f32 %v395_v62, %v371_v61 }
 0x146   :  { %v408_v7 = vpack.c.bf16 %v404_v0, %v400_v63  ;;  %v405_v8 = vmul.f32 %v397_v2, %v373_v1 }
 0x147   :  { %v407_v9 = vpack.c.bf16 %v403_v5, %v399_v3 }
 0x148   :  { %v409_v10 = vpack.c.bf16 %v405_v8, %v401_v6 }
 0x149   :  { %705 = vmatprep.mubr.bf16.mxu0 %v407_v9 }
 0x14a   :  { %746 = vmatprep.mubr.bf16.mxu1 %v409_v10  ;;  %706 = vmatmul.mubr.bf16.vlgmr.msra.gmra.mrb[4].mxu0 %v406_v4 }
 0x14b   :  { %747 = vmatmul.mubr.bf16.vlgmr.msra.gmra.mrb[4].mxu1 %v408_v7 }
 0x21d   :  { %v856_v11 = vpop.f32.mrb[4].mxu0 }
 0x21e   :  { %v878_v12 = vpop.f32.mrb[4].mxu1  ;;  %v857_v14 = vpop.f32.mrb[5].mxu0 }
 0x21f   :  { %v858_v15 = vadd.f32 %v857_v14, %v856_v11  ;;  %v879_v16 = vpop.f32.mrb[5].mxu1  ;;  %v859_v17 = vpop.f32.mrb[6].mxu0 }
 0x220   :  { %v880_v18 = vadd.f32 %v879_v16, %v878_v12  ;;  %v881_v19 = vpop.f32.mrb[6].mxu1  ;;  %v860_v20 = vpop.f32.mrb[7].mxu0 }
 0x221   :  { %v708_v21 = vadd.f32 %v858_v15, %v807_v13  ;;  %v861_v22 = vadd.f32 %v860_v20, %v859_v17  ;;  %v882_v23 = vpop.f32.mrb[7].mxu1 }
 0x222   :  { %v883_v24 = vadd.f32 %v882_v23, %v881_v19 }
 0x223   :  { %v749_v25 = vadd.f32 %v880_v18, %v708_v21  ;;  %v711_v26 = vadd.f32 %v861_v22, %v807_v13 }
 0x225   :  { %755 = vst [vmem:[#allocation8] sm:$0xff] %v749_v25  ;;  %v752_v27 = vadd.f32 %v883_v24, %v711_v26 }
 0x227   :  { %756 = vst [vmem:[#allocation8 + $0x8] sm:$0xff] %v752_v27 }
 0x228   :  { %1068 = shalt.err (!%p1065_p0)
}
 0x229   :  { %s1069_s14 = scalar_lea.hbm %s1191_s5, 256 }
 0x22a   :  { %p1070_p1 = scmp.ne.s32.totalorder %s1191_s5, %s1069_s14  ;;  %p1073_p2 = scmp.lt.u32.totalorder %s1069_s14, %s1191_s5 }
 0x22c   :  { %p1075_p3 = pnand %p1073_p2, %p1070_p1 }
 0x22e   :  { %1078 = shalt.err (!%p1075_p3)
}
 0x22f   :  { %768 = dma.vmem_to_hbm [thread:$0]  %s763_s11, 256, %s1191_s5, [#allocation4], %s1089_s1, %s1089_s1, %s1090_s17  }
 0x230   :  { %1083 = dma.done.wait [#allocation4], 256  }
 0x231   :  { %1084 = vsyncadd [#allocation4], 4294967040 }
 0x232   :  { %772 = vsyncpa [#allocation3], 1 }
 0x233   :  { %773 = vsyncpa [#allocation6], 1 }
 0x234   :  { %774 = vsyncpa [#allocation4], 1 }

</bundles_post_ra>
